<compile_context>
chip_gen: v7x
topology: tpu7x:2x2x1
jax: 0.10.0
libtpu: 0.0.40
codegen_flags: <defaults>
</compile_context>

<pallas_src>
import functools

import jax
import jax.numpy as jnp
from jax.experimental import pallas as pl
from jax.experimental.pallas import tpu as pltpu

BN_EPS = 1e-5


def _mce_kernel(feat_ref, w_in_ref, b1_ref, w_tail_ref, b_tail_ref, out_ref):
    # Layer 1: temporal mean + concat + Linear1 + BatchNorm all pre-folded into
    # (w_in, b1). feat and w_in are bf16 -> native MXU bf16 path, f32 accumulation.
    h = jnp.dot(feat_ref[...], w_in_ref[...],
                preferred_element_type=jnp.float32) + b1_ref[...]
    h = jnp.maximum(h, 0.0)                       # ReLU
    # TODO(synk): Dropout(p=0.2) omitted — identity under eval/inference semantics.
    # Linear2·Linear3·Linear4 collapsed host-side (no nonlinearity between them).
    out = (jnp.dot(h, w_tail_ref[...], preferred_element_type=jnp.float32)
           + b_tail_ref[...])
    out_ref[...] = out.astype(out_ref.dtype)


def _fold_params(params, audio_dim, t_a, t_v, out_pad):
    """BN->Linear1 fold, mean/concat absorbed into a time-tiled first-layer weight,
    activation-free Linear2·3·4 collapsed, output columns zero-padded to out_pad."""
    scale = params["gamma"] * jax.lax.rsqrt(params["running_var"] + BN_EPS)   # (1, H)
    w1f = params["w1"] * scale                                                # (A+V, H)
    b1f = (params["b1"] - params["running_mean"]) * scale + params["beta"]    # (1, H)

    w1a = w1f[:audio_dim, :] * (1.0 / t_a)       # (A, H) — 1/T_a folded in
    w1v = w1f[audio_dim:, :] * (1.0 / t_v)       # (V, H) — 1/T_v folded in
    # Tile along time so the flattened (T_a*A + T_v*V) feature row multiplies it
    # directly:  feat_flat @ w_in  ==  mean(audio)@w1a' + mean(video)@w1v'.
    w_in = jnp.concatenate(
        [jnp.tile(w1a, (t_a, 1)), jnp.tile(w1v, (t_v, 1))], axis=0)           # (F, H)

    # Collapse Linear2·Linear3·Linear4 into one layer (no activation between them).
    w_tail = params["w2"] @ params["w3"] @ params["w4"]                       # (H, C)
    b_tail = (params["b2"] @ params["w3"] + params["b3"]) @ params["w4"] + params["b4"]

    num_classes = w_tail.shape[1]
    pad = out_pad - num_classes
    w_tail = jnp.pad(w_tail, ((0, 0), (0, pad)))                              # (H, out_pad)
    b_tail = jnp.pad(b_tail, ((0, 0), (0, pad)))                              # (1, out_pad)

    return w_in.astype(jnp.bfloat16), b1f, w_tail, b_tail


@functools.partial(jax.jit, static_argnames=("tile_b",))
def mean_concat_early(audio, video, params, *, tile_b=128):
    """Fused MeanConcatEarly forward pass (eval semantics) as one Pallas call."""
    B, T_a, A = audio.shape
    _, T_v, V = video.shape
    F = T_a * A + T_v * V
    num_classes = params["w4"].shape[1]
    out_pad = ((num_classes + 127) // 128) * 128   # full-lane (unmasked) output stores

    # Batch tile: as large as possible (fills MXU M rows, amortizes per-step overhead),
    # clamped to B; when it tiles B it must be a multiple of 8 sublanes.
    tile_b = int(min(tile_b, B))
    if tile_b < B:
        tile_b = max(8, (tile_b // 8) * 8)
    grid = (pl.cdiv(B, tile_b),)
    # NOTE: when B % tile_b != 0 the padded rows of the last tile compute garbage that
    # is never written back to valid output rows — intentional, do not mask.

    w_in, b1f, w_tail, b_tail = _fold_params(params, A, T_a, T_v, out_pad)
    resident = (w_in, b1f, w_tail, b_tail)

    # Lane-dense bf16 activations: (B, T_a*A + T_v*V) rows. The reshape is free and the
    # concat fuses with the bf16 cast into a single XLA pass over the inputs.
    feat = jnp.concatenate(
        [audio.reshape(B, T_a * A), video.reshape(B, T_v * V)], axis=1
    ).astype(jnp.bfloat16)                                                    # (B, F)

    # VMEM budget: double-buffered in/out tiles + resident weights + compiler headroom,
    # capped at 48 MiB so v7x (64 MiB physical per TC) keeps scratch headroom.
    resident_bytes = sum(int(x.size) * x.dtype.itemsize for x in resident)
    io_bytes = 2 * tile_b * F * 2 + 2 * tile_b * out_pad * 4
    vmem_limit = int(min(48 << 20, max(io_bytes + resident_bytes + (8 << 20), 32 << 20)))

    in_specs = [
        pl.BlockSpec((tile_b, F), lambda i: (i, 0)),
        # Resident weights/bias: full-array blocks with constant index_map -> loaded
        # once and kept in VMEM across all grid steps.
        # TODO(synk): pipeline_mode=pl.Buffered(1) would drop their second pipeline
        # buffer; negligible at these hidden sizes so left at the default.
        pl.BlockSpec(w_in.shape, lambda i: (0, 0)),
        pl.BlockSpec(b1f.shape, lambda i: (0, 0)),
        pl.BlockSpec(w_tail.shape, lambda i: (0, 0)),
        pl.BlockSpec(b_tail.shape, lambda i: (0, 0)),
    ]

    out = pl.pallas_call(
        _mce_kernel,
        out_shape=jax.ShapeDtypeStruct((B, out_pad), jnp.float32),
        grid=grid,
        in_specs=in_specs,
        out_specs=pl.BlockSpec((tile_b, out_pad), lambda i: (i, 0)),
        compiler_params=pltpu.CompilerParams(
            # Batch tiles are independent -> shard across TensorCores on v7x when
            # grid >= 2 (for small B, tile_b == B -> grid=(1,), single core).
            dimension_semantics=("parallel",),
            vmem_limit_bytes=vmem_limit,
        ),
    )(feat, *resident)

    return out[:, :num_classes]


def init_params(key, audio_embed_dim, video_embed_dim, hidden_dim, num_classes):
    """Deterministic synthetic parameter init (shapes match the PyTorch module)."""
    in_dim = audio_embed_dim + video_embed_dim
    h2, h4 = hidden_dim // 2, hidden_dim // 4
    keys = jax.random.split(key, 10)

    def lin(kw, kb, fan_in, fan_out):
        bound = 1.0 / jnp.sqrt(fan_in)
        w = jax.random.uniform(kw, (fan_in, fan_out), jnp.float32, -bound, bound)
        b = jax.random.uniform(kb, (1, fan_out), jnp.float32, -bound, bound)
        return w, b

    w1, b1 = lin(keys[0], keys[1], in_dim, hidden_dim)
    w2, b2 = lin(keys[2], keys[3], hidden_dim, h2)
    w3, b3 = lin(keys[4], keys[5], h2, h4)
    w4, b4 = lin(keys[6], keys[7], h4, num_classes)

    return {
        "w1": w1, "b1": b1,
        # BatchNorm1d params / running stats (non-trivial for a real test).
        "gamma": 1.0 + 0.1 * jax.random.normal(keys[8], (1, hidden_dim), jnp.float32),
        "beta": 0.05 * jnp.arange(hidden_dim, dtype=jnp.float32)[None, :],
        "running_mean": 0.02 * jnp.arange(hidden_dim, dtype=jnp.float32)[None, :],
        "running_var": 1.0 + 0.1 * jnp.abs(
            jax.random.normal(keys[9], (1, hidden_dim), jnp.float32)),
        "w2": w2, "b2": b2,
        "w3": w3, "b3": b3,
        "w4": w4, "b4": b4,
    }


def reference_forward(audio, video, p):
    """Pure-JAX reference with identical (eval-mode) semantics (un-folded)."""
    a = jnp.mean(audio, axis=1)
    v = jnp.mean(video, axis=1)
    feat = jnp.concatenate([a, v], axis=1)
    h = feat @ p["w1"] + p["b1"]
    h = (h - p["running_mean"]) / jnp.sqrt(p["running_var"] + BN_EPS) * p["gamma"] + p["beta"]
    h = jnp.maximum(h, 0.0)
    h = h @ p["w2"] + p["b2"]
    h = h @ p["w3"] + p["b3"]
    return h @ p["w4"] + p["b4"]


if __name__ == "__main__":
    # Small shapes consistent with the module's forward.
    B, T_A, T_V = 16, 6, 4
    AUDIO_DIM, VIDEO_DIM = 64, 64
    HIDDEN_DIM, NUM_CLASSES = 32, 10

    key = jax.random.PRNGKey(0)
    k_audio, k_video, k_params = jax.random.split(key, 3)

    audio = jax.random.normal(k_audio, (B, T_A, AUDIO_DIM), jnp.float32)
    video = jax.random.normal(k_video, (B, T_V, VIDEO_DIM), jnp.float32)
    params = init_params(k_params, AUDIO_DIM, VIDEO_DIM, HIDDEN_DIM, NUM_CLASSES)

    out = mean_concat_early(audio, video, params)   # tile_b=128 clamps to B=16, grid=(1,)
    out = jax.block_until_ready(out)

    ref = reference_forward(audio, video, params)
    assert out.shape == (B, NUM_CLASSES)
    max_err = float(jnp.max(jnp.abs(out - ref)))
    # bf16 activations / first-layer weight (f32 accumulation) -> loosened tolerance.
    assert jnp.allclose(out, ref, atol=5e-2, rtol=5e-2), f"max abs err = {max_err}"

    print("KERNEL_OK")
</pallas_src>

<mosaic_0001>
module attributes {stable_mosaic.version = 11 : i64} {
  func.func @_mce_kernel(%arg0: i32, %arg1: memref<16x640xbf16, #tpu.memory_space<vmem>>, %arg2: memref<640x32xbf16, #tpu.memory_space<vmem>>, %arg3: memref<1x32xf32, #tpu.memory_space<vmem>>, %arg4: memref<32x128xf32, #tpu.memory_space<vmem>>, %arg5: memref<1x128xf32, #tpu.memory_space<vmem>>, %arg6: memref<16x128xf32, #tpu.memory_space<vmem>>) attributes {dimension_semantics = [#tpu.dimension_semantics<parallel>], iteration_bounds = array<i64: 1>, scalar_prefetch = 0 : i64, scratch_operands = 0 : i64, tpu.core_type = #tpu.core_type<tc>, window_params = [{transform_indices = @transform_0, window_bounds = array<i64: 16, 640>}, {pipeline_mode = #tpu.pipeline_mode<synchronous>, transform_indices = @transform_1, window_bounds = array<i64: 640, 32>}, {pipeline_mode = #tpu.pipeline_mode<synchronous>, transform_indices = @transform_2, window_bounds = array<i64: 1, 32>}, {pipeline_mode = #tpu.pipeline_mode<synchronous>, transform_indices = @transform_3, window_bounds = array<i64: 32, 128>}, {pipeline_mode = #tpu.pipeline_mode<synchronous>, transform_indices = @transform_4, window_bounds = array<i64: 1, 128>}, {transform_indices = @transform_5, window_bounds = array<i64: 16, 128>}]} {
    %c0 = arith.constant 0 : index
    %c0_0 = arith.constant 0 : index
    %0 = vector.load %arg1[%c0, %c0_0] : memref<16x640xbf16, #tpu.memory_space<vmem>>, vector<16x640xbf16>
    %c0_1 = arith.constant 0 : index
    %c0_2 = arith.constant 0 : index
    %1 = vector.load %arg2[%c0_1, %c0_2] : memref<640x32xbf16, #tpu.memory_space<vmem>>, vector<640x32xbf16>
    %cst = arith.constant dense<0.000000e+00> : vector<16x32xf32>
    %2 = tpu.matmul %0, %1, %cst {dimension_numbers = #tpu.dot_dimension_numbers<[1], [0], [0], [1], [0, 0, 1, 1], [], []>} : vector<16x640xbf16>, vector<640x32xbf16>, vector<16x32xf32> -> vector<16x32xf32>
    %c0_3 = arith.constant 0 : index
    %c0_4 = arith.constant 0 : index
    %3 = vector.load %arg3[%c0_3, %c0_4] : memref<1x32xf32, #tpu.memory_space<vmem>>, vector<1x32xf32>
    %4 = vector.broadcast %3 : vector<1x32xf32> to vector<16x32xf32>
    %5 = arith.addf %2, %4 : vector<16x32xf32>
    %cst_5 = arith.constant 0.000000e+00 : f32
    %6 = vector.broadcast %cst_5 : f32 to vector<16x32xf32>
    %7 = arith.maximumf %5, %6 : vector<16x32xf32>
    %c0_6 = arith.constant 0 : index
    %c0_7 = arith.constant 0 : index
    %8 = vector.load %arg4[%c0_6, %c0_7] : memref<32x128xf32, #tpu.memory_space<vmem>>, vector<32x128xf32>
    %cst_8 = arith.constant dense<0.000000e+00> : vector<16x128xf32>
    %9 = tpu.matmul %7, %8, %cst_8 {dimension_numbers = #tpu.dot_dimension_numbers<[1], [0], [0], [1], [0, 0, 1, 1], [], []>} : vector<16x32xf32>, vector<32x128xf32>, vector<16x128xf32> -> vector<16x128xf32>
    %c0_9 = arith.constant 0 : index
    %c0_10 = arith.constant 0 : index
    %10 = vector.load %arg5[%c0_9, %c0_10] : memref<1x128xf32, #tpu.memory_space<vmem>>, vector<1x128xf32>
    %11 = vector.broadcast %10 : vector<1x128xf32> to vector<16x128xf32>
    %12 = arith.addf %9, %11 : vector<16x128xf32>
    %c0_11 = arith.constant 0 : index
    %c0_12 = arith.constant 0 : index
    %13 = vector.load %arg6[%c0_11, %c0_12] : memref<16x128xf32, #tpu.memory_space<vmem>>, vector<16x128xf32>
    tpu.vector_store %arg6[%c0_11, %c0_12], %12 {strides = array<i32>} : memref<16x128xf32, #tpu.memory_space<vmem>>, vector<16x128xf32>,
    return
  }
  func.func @transform_0(%arg0: i32) -> (i32, i32) {
    %c0_i32 = arith.constant 0 : i32
    %c0_i32_0 = arith.constant 0 : i32
    return %arg0, %c0_i32 : i32, i32
  }
  func.func @transform_1(%arg0: i32) -> (i32, i32) {
    %c0_i32 = arith.constant 0 : i32
    %c0_i32_0 = arith.constant 0 : i32
    %c0_i32_1 = arith.constant 0 : i32
    return %c0_i32, %c0_i32_0 : i32, i32
  }
  func.func @transform_2(%arg0: i32) -> (i32, i32) {
    %c0_i32 = arith.constant 0 : i32
    %c0_i32_0 = arith.constant 0 : i32
    %c0_i32_1 = arith.constant 0 : i32
    return %c0_i32, %c0_i32_0 : i32, i32
  }
  func.func @transform_3(%arg0: i32) -> (i32, i32) {
    %c0_i32 = arith.constant 0 : i32
    %c0_i32_0 = arith.constant 0 : i32
    %c0_i32_1 = arith.constant 0 : i32
    return %c0_i32, %c0_i32_0 : i32, i32
  }
  func.func @transform_4(%arg0: i32) -> (i32, i32) {
    %c0_i32 = arith.constant 0 : i32
    %c0_i32_0 = arith.constant 0 : i32
    %c0_i32_1 = arith.constant 0 : i32
    return %c0_i32, %c0_i32_0 : i32, i32
  }
  func.func @transform_5(%arg0: i32) -> (i32, i32) {
    %c0_i32 = arith.constant 0 : i32
    %c0_i32_0 = arith.constant 0 : i32
    return %arg0, %c0_i32 : i32, i32
  }
}

</mosaic_0001>

<bundles_post_ra>
// kernel: tile.0
= control target key start
LH: loop header
LB: loop body
LE: loop exit
PB: predicated region body
PF: predicated region fallthrough
CT: control target
= control target key end

     0   :  { %s984_s12 = smov 3  ;;  %s986_s13 = smov 3  ;;  %vm515_vm0 = vcmask 523264   ;;  %vm707_vm1 = vcmask 1047556   ;;  %vm711_vm2 = vcmask 1048064   ;;  %s1114_s0 = inlined_call_operand.vmem [shape: bf16[4,64,32], index: 0, kind: input, shape index: {}]   ;;  %s1115_s1 = inlined_call_operand.vmem [shape: bf16[256,32], index: 1, kind: output, shape index: {}]  }
   0x1   :  { %v890_v0 = vld [vmem:[%s1114_s0 + $0x2a] sm:$0xff]   ;;  %v893_v1 = vld [vmem:[%s1114_s0 + $0x22] sm:$0xff]   ;;  %v897_v2 = vld [vmem:[%s1114_s0 + $0x1a] sm:$0xff]   ;;  %s997_s20 = smov 3  ;;  %s999_s21 = smov 3 }
   0x2   :  { %v145_v3 = vunpack.c.h.bf16 %v890_v0  ;;  %v161_v4 = vunpack.c.l.bf16 %v890_v0  ;;  %v193_v5 = vunpack.c.h.bf16 %v893_v1  ;;  %v905_v6 = vld [vmem:[%s1114_s0 + $0xc] sm:$0xff]   ;;  %v908_v7 = vld [vmem:[%s1114_s0 + $0x4] sm:$0xff]   ;;  %v912_v8 = vld [vmem:[%s1114_s0] ss:$52 sps:$4 sm:$0xff]   ;;  %v225_v9 = vunpack.c.l.bf16 %v893_v1  ;;  %s1001_s22 = smov 3  ;;  %s1003_s23 = smov 3 }
   0x3   :  { %v257_v10 = vunpack.c.h.bf16 %v897_v2  ;;  %v882_v11 = vld [vmem:[%s1114_s0 + $0x38] sm:$0xff]   ;;  %v385_v12 = vunpack.c.h.bf16 %v905_v6  ;;  %v401_v13 = vunpack.c.l.bf16 %v905_v6  ;;  %v433_v14 = vunpack.c.h.bf16 %v908_v7  ;;  %s1008_s26 = smov 3  ;;  %s1010_s27 = smov 3  ;;  %v888_v17 = vld [vmem:[%s1114_s0 + $0x14] ss:$30 sps:$2 sm:$0xf]  }
   0x4   :  { %148 = vst [vmem:[#allocation1 + $0xb8] ss:$8 sps:$4 sm:$0xff] %v145_v3   ;;  %164 = vst [vmem:[#allocation1 + $0xa8] ss:$8 sps:$4 sm:$0xff] %v161_v4   ;;  %v465_v15 = vunpack.c.l.bf16 %v908_v7  ;;  %v496_v16 = vunpack.c.l.bf16 %v912_v8  ;;  %s1012_s28 = smov 3  ;;  %s1014_s29 = smov 3  ;;  %v17_v18 = vunpack.c.h.bf16 %v882_v11  ;;  %v49_v20 = vunpack.c.l.bf16 %v882_v11 }
   0x5   :  { %196 = vst [vmem:[#allocation1 + $0x98] ss:$8 sps:$4 sm:$0xff] %v193_v5   ;;  %228 = vst [vmem:[#allocation1 + $0x88] ss:$8 sps:$4 sm:$0xff] %v225_v9   ;;  %s1019_s3 = smov 3  ;;  %s626_s4 = smov 3  ;;  %v81_v21 = vunpack.c.h.bf16 %v912_v8  ;;  %v113_v22 = vunpack.c.l.bf16 %v888_v17  ;;  %v289_v23 = vunpack.c.l.bf16 %v897_v2 }
   0x6   :  { %260 = vst [vmem:[#allocation1 + $0x78] ss:$8 sps:$4 sm:$0xff] %v257_v10   ;;  %388 = vst [vmem:[#allocation1 + $0x40] ss:$8 sps:$4 sm:$0xff] %v385_v12   ;;  %v901_v19 = vld [vmem:[%s1114_s0 + $0x16] sm:$0xf]  }
   0x7   :  { %404 = vst [vmem:[#allocation1 + $0x30] ss:$8 sps:$4 sm:$0xff] %v401_v13   ;;  %436 = vst [vmem:[#allocation1 + $0x20] ss:$8 sps:$4 sm:$0xff] %v433_v14   ;;  %s632_s0 = smov 3  ;;  %s638_s7 = smov 3  ;;  %v321_v24 = vunpack.c.l.bf16 %v901_v19 }
   0x8   :  { %468 = vst [vmem:[#allocation1 + $0x10] ss:$8 sps:$4 sm:$0xff] %v465_v15   ;;  %499 = vst [vmem:[#allocation1] ss:$8 sps:$4 sm:$0xff] %v496_v16   ;;  %s1024_s8 = smov 3  ;;  %s1026_s9 = smov 3 }
   0x9   :  { %20 = vst [vmem:[#allocation1 + $0xf0] ss:$8 sps:$4 sm:$0xff] %v17_v18   ;;  %52 = vst [vmem:[#allocation1 + $0xe0] ss:$8 sps:$4 sm:$0xff] %v49_v20   ;;  %s1028_s10 = smov 3  ;;  %s1030_s11 = smov 3 }
   0xa   :  { %84 = vst [vmem:[#allocation1 + $0xd0] ss:$8 sps:$4 sm:$0xff] %v81_v21   ;;  %116 = vst [vmem:[#allocation1 + $0x50] ss:$120 sps:$4 sm:$0xff] %v113_v22   ;;  %s1032_s14 = smov 3  ;;  %s596_s15 = smov 3 }
   0xb   :  { %v639_v27 = vld [vmem:[#allocation1 + $0xa8] ss:$2 sm:%s638_s7]   ;;  %292 = vst [vmem:[#allocation1 + $0x68] ss:$8 sps:$4 sm:$0xff] %v289_v23   ;;  %324 = vst [vmem:[#allocation1 + $0x58] ss:$8 sps:$4 sm:$0xff] %v321_v24  }
   0xc   :  { %v627_v25 = vld [vmem:[#allocation1 + $0x98] ss:$2 sm:%s626_s4]   ;;  %v615_v29 = vld [vmem:[#allocation1 + $0x88] ss:$2 sm:%s1014_s29]   ;;  %s602_s16 = smov 3  ;;  %s964_s17 = smov 64  }
   0xd   :  { %v633_v26 = vld [vmem:[#allocation1 + $0xa0] ss:$2 sm:%s632_s0]   ;;  %v621_v30 = vld [vmem:[#allocation1 + $0x90] ss:$2 sm:%s1019_s3]   ;;  %s650_s18 = smov 3  ;;  %s656_s19 = smov 3 }
   0xe   :  { %v609_v28 = vld [vmem:[#allocation1 + $0x80] ss:$2 sm:%s1012_s28]   ;;  %630 = vst.msk [vmem:[#allocation0 + $0x23] ss:$8 sm:$0x3] %vm515_vm0, %v627_v25   ;;  %s686_s24 = smov 3 }
   0xf   :  { %636 = vst.msk [vmem:[#allocation0 + $0x24] ss:$8 sm:$0x3] %vm515_vm0, %v633_v26   ;;  %642 = vst.msk [vmem:[#allocation0 + $0x25] ss:$8 sm:$0x3] %vm515_vm0, %v639_v27  }
  0x10   :  { %v537_v31 = vld [vmem:[#allocation1 + $0x20] ss:$2 sm:%s1001_s22]   ;;  %v549_v33 = vld [vmem:[#allocation1 + $0x30] ss:$2 sm:%s1008_s26]   ;;  %s674_s22 = smov 3  ;;  %s692_s25 = smov 3 }
  0x11   :  { %v543_v32 = vld [vmem:[#allocation1 + $0x28] ss:$2 sm:%s1003_s23]   ;;  %612 = vst.msk [vmem:[#allocation0 + $0x20] ss:$8 sm:$0x3] %vm515_vm0, %v609_v28   ;;  %s680_s23 = smov 3 }
  0x12   :  { %618 = vst.msk [vmem:[#allocation0 + $0x21] ss:$8 sm:$0x3] %vm515_vm0, %v615_v29   ;;  %624 = vst.msk [vmem:[#allocation0 + $0x22] ss:$8 sm:$0x3] %vm515_vm0, %v621_v30  }
  0x13   :  { %v514_v34 = vld [vmem:[#allocation1] ss:$2 sm:%s984_s12]   ;;  %v525_v36 = vld [vmem:[#allocation1 + $0x10] ss:$2 sm:%s997_s20]   ;;  %s584_s12 = smov 3  ;;  %s662_s20 = smov 3 }
  0x14   :  { %v519_v35 = vld [vmem:[#allocation1 + $0x8] ss:$2 sm:%s986_s13]   ;;  %540 = vst.msk [vmem:[#allocation0 + $0x4] ss:$8 sm:$0x3] %vm515_vm0, %v537_v31   ;;  %s590_s13 = smov 3 }
  0x15   :  { %546 = vst.msk [vmem:[#allocation0 + $0x5] ss:$8 sm:$0x3] %vm515_vm0, %v543_v32   ;;  %552 = vst.msk [vmem:[#allocation0 + $0x6] ss:$8 sm:$0x3] %vm515_vm0, %v549_v33  }
  0x16   :  { %516 = vst.msk [vmem:[#allocation0] ss:$8 sm:$0x3] %vm515_vm0, %v514_v34   ;;  %522 = vst.msk [vmem:[#allocation0 + $0x1] ss:$8 sm:$0x3] %vm515_vm0, %v519_v35  }
  0x17   :  { %528 = vst.msk [vmem:[#allocation0 + $0x2] ss:$8 sm:$0x3] %vm515_vm0, %v525_v36   ;;  %v531_v37 = vld [vmem:[#allocation1 + $0x18] ss:$2 sm:%s999_s21]   ;;  %s668_s21 = smov 3 }
  0x18   :  { %v555_v38 = vld [vmem:[#allocation1 + $0x38] ss:$2 sm:%s1010_s27]   ;;  %534 = vst.msk [vmem:[#allocation0 + $0x3] ss:$8 sm:$0x3] %vm515_vm0, %v531_v37   ;;  %s698_s26 = smov 3 }
  0x19   :  { %v645_v39 = vld [vmem:[#allocation1 + $0xb0] ss:$2 sm:%s1024_s8]   ;;  %558 = vst.msk [vmem:[#allocation0 + $0x7] ss:$8 sm:$0x3] %vm515_vm0, %v555_v38  }
  0x1a   :  { %v704_v40 = vld [vmem:[#allocation1 + $0x1] ss:$8 sm:$0xf]   ;;  %648 = vst.msk [vmem:[#allocation0 + $0x26] ss:$8 sm:$0x3] %vm515_vm0, %v645_v39  }
  0x1b   :  { %v706_v41 = vld [vmem:[#allocation1 + $0x1] ss:$8 sm:$0xf0]   ;;  %v561_v46 = vld [vmem:[#allocation1 + $0x40] ss:$2 sm:%s1026_s9]  }
  0x1c   :  { %v708_v42 = vsel %vm707_vm1, %v706_v41, %v704_v40  ;;  %v714_v43 = vld [vmem:[#allocation1 + $0x81] ss:$8 sm:$0xf]   ;;  %v567_v47 = vld [vmem:[#allocation1 + $0x48] ss:$2 sm:%s1028_s10]  }
  0x1d   :  { %v716_v44 = vld [vmem:[#allocation1 + $0x81] ss:$8 sm:$0xf0]   ;;  %v573_v48 = vld [vmem:[#allocation1 + $0x50] ss:$2 sm:%s1030_s11]  }
  0x1e   :  { %v718_v45 = vsel %vm707_vm1, %v716_v44, %v714_v43  ;;  %564 = vst.msk [vmem:[#allocation0 + $0x10] ss:$8 sm:$0x3] %vm515_vm0, %v561_v46   ;;  %570 = vst.msk [vmem:[#allocation0 + $0x11] ss:$8 sm:$0x3] %vm515_vm0, %v567_v47  }
  0x1f   :  { %v944_v49 = vpack.i.bf16 %v718_v45, %v708_v42  ;;  %576 = vst.msk [vmem:[#allocation0 + $0x12] ss:$8 sm:$0x3] %vm515_vm0, %v573_v48   ;;  %v579_v50 = vld [vmem:[#allocation1 + $0x58] ss:$2 sm:%s1032_s14]  }
  0x20   :  { %582 = vst.msk [vmem:[#allocation0 + $0x13] ss:$8 sm:$0x3] %vm515_vm0, %v579_v50   ;;  %v585_v51 = vld [vmem:[#allocation1 + $0x60] ss:$2 sm:%s584_s12]  }
  0x21   :  { %v591_v52 = vld [vmem:[#allocation1 + $0x68] ss:$2 sm:%s590_s13]   ;;  %945 = vrot.lane.b32.xlu0 %v944_v49, %s964_s17  ;;  %588 = vst.msk [vmem:[#allocation0 + $0x14] ss:$8 sm:$0x3] %vm515_vm0, %v585_v51  }
  0x22   :  { %594 = vst.msk [vmem:[#allocation0 + $0x15] ss:$8 sm:$0x3] %vm515_vm0, %v591_v52   ;;  %v597_v53 = vld [vmem:[#allocation1 + $0x70] ss:$2 sm:%s596_s15]  }
  0x23   :  { %v603_v54 = vld [vmem:[#allocation1 + $0x78] ss:$2 sm:%s602_s16]   ;;  %600 = vst.msk [vmem:[#allocation0 + $0x16] ss:$8 sm:$0x3] %vm515_vm0, %v597_v53  }
  0x24   :  { %606 = vst.msk [vmem:[#allocation0 + $0x17] ss:$8 sm:$0x3] %vm515_vm0, %v603_v54   ;;  %v651_v55 = vld [vmem:[#allocation1 + $0xb8] ss:$2 sm:%s650_s18]  }
  0x25   :  { %v657_v56 = vld [vmem:[#allocation1 + $0xc0] ss:$2 sm:%s656_s19]   ;;  %654 = vst.msk [vmem:[#allocation0 + $0x27] ss:$8 sm:$0x3] %vm515_vm0, %v651_v55  }
  0x26   :  { %660 = vst.msk [vmem:[#allocation0 + $0x30] ss:$8 sm:$0x3] %vm515_vm0, %v657_v56   ;;  %v663_v57 = vld [vmem:[#allocation1 + $0xc8] ss:$2 sm:%s662_s20]  }
  0x27   :  { %v669_v58 = vld [vmem:[#allocation1 + $0xd0] ss:$2 sm:%s668_s21]   ;;  %666 = vst.msk [vmem:[#allocation0 + $0x31] ss:$8 sm:$0x3] %vm515_vm0, %v663_v57  }
  0x28   :  { %672 = vst.msk [vmem:[#allocation0 + $0x32] ss:$8 sm:$0x3] %vm515_vm0, %v669_v58   ;;  %v675_v59 = vld [vmem:[#allocation1 + $0xd8] ss:$2 sm:%s674_s22]  }
  0x29   :  { %v681_v60 = vld [vmem:[#allocation1 + $0xe0] ss:$2 sm:%s680_s23]   ;;  %678 = vst.msk [vmem:[#allocation0 + $0x33] ss:$8 sm:$0x3] %vm515_vm0, %v675_v59  }
  0x2a   :  { %684 = vst.msk [vmem:[#allocation0 + $0x34] ss:$8 sm:$0x3] %vm515_vm0, %v681_v60   ;;  %v687_v61 = vld [vmem:[#allocation1 + $0xe8] ss:$2 sm:%s686_s24]  }
  0x2b   :  { %v747_v62 = vld [vmem:[#allocation1 + $0x41] ss:$8 sm:$0xf]   ;;  %690 = vst.msk [vmem:[#allocation0 + $0x35] ss:$8 sm:$0x3] %vm515_vm0, %v687_v61  }
  0x2c   :  { %v749_v63 = vld [vmem:[#allocation1 + $0x41] ss:$8 sm:$0xf0]   ;;  %v693_v3 = vld [vmem:[#allocation1 + $0xf0] ss:$2 sm:%s692_s25]  }
  0x2d   :  { %v758_v0 = vld [vmem:[#allocation1 + $0xc1] ss:$8 sm:$0xf]   ;;  %v751_v1 = vsel %vm707_vm1, %v749_v63, %v747_v62  ;;  %696 = vst.msk [vmem:[#allocation0 + $0x36] ss:$8 sm:$0x3] %vm515_vm0, %v693_v3  }
  0x2e   :  { %v760_v2 = vld [vmem:[#allocation1 + $0xc1] ss:$8 sm:$0xf0]   ;;  %v699_v5 = vld [vmem:[#allocation1 + $0xf8] ss:$2 sm:%s698_s26]  }
  0x2f   :  { %v762_v4 = vsel %vm707_vm1, %v760_v2, %v758_v0  ;;  %v725_v6 = vld [vmem:[#allocation1 + $0x3] ss:$8 sm:$0xf]   ;;  %702 = vst.msk [vmem:[#allocation0 + $0x37] ss:$8 sm:$0x3] %vm515_vm0, %v699_v5  }
  0x30   :  { %v954_v7 = vpack.i.bf16 %v762_v4, %v751_v1  ;;  %v727_v8 = vld [vmem:[#allocation1 + $0x3] ss:$8 sm:$0xf0]  }
  0x31   :  { %v736_v9 = vld [vmem:[#allocation1 + $0x83] ss:$8 sm:$0xf]   ;;  %v729_v10 = vsel %vm707_vm1, %v727_v8, %v725_v6 }
  0x32   :  { %v738_v11 = vld [vmem:[#allocation1 + $0x83] ss:$8 sm:$0xf0]   ;;  %955 = vrot.lane.b32.xlu1 %v954_v7, %s964_s17 }
  0x33   :  { %v769_v12 = vld [vmem:[#allocation1 + $0x43] ss:$8 sm:$0xf]   ;;  %v740_v13 = vsel %vm707_vm1, %v738_v11, %v736_v9 }
  0x34   :  { %v771_v14 = vld [vmem:[#allocation1 + $0x43] ss:$8 sm:$0xf0]   ;;  %v949_v16 = vpack.i.bf16 %v740_v13, %v729_v10 }
  0x35   :  { %v780_v15 = vld [vmem:[#allocation1 + $0xc3] ss:$8 sm:$0xf]   ;;  %v773_v17 = vsel %vm707_vm1, %v771_v14, %v769_v12 }
  0x36   :  { %v782_v18 = vld [vmem:[#allocation1 + $0xc3] ss:$8 sm:$0xf0]   ;;  %950 = vrot.lane.b32.xlu0 %v949_v16, %s964_s17 }
  0x37   :  { %v784_v19 = vsel %vm707_vm1, %v782_v18, %v780_v15 }
  0x38   :  { %v959_v20 = vpack.i.bf16 %v784_v19, %v773_v17 }
  0x3a   :  { %960 = vrot.lane.b32.xlu1 %v959_v20, %s964_s17 }
  0x93   :  { %v946_v21 = vpop.permute.xlu0 %945 }
  0x94   :  { %v948_v22 = vunpack.i.h.bf16 %v946_v21  ;;  %v947_v23 = vunpack.i.l.bf16 %v946_v21 }
  0x96   :  { %723 = vst.msk [vmem:[#allocation0 + $0x20] sm:$0xff] %vm711_vm2, %v948_v22   ;;  %712 = vst.msk [vmem:[#allocation0] sm:$0xff] %vm711_vm2, %v947_v23  }
  0x9d   :  { %v819_v33 = vld [vmem:[#allocation0 + $0x20] sm:$0xff] }
  0x9e   :  { %v794_v34 = vld [vmem:[#allocation0] sm:$0xff] }
  0xa4   :  { %v956_v24 = vpop.permute.xlu1 %955 }
  0xa5   :  { %v958_v25 = vunpack.i.h.bf16 %v956_v24  ;;  %v957_v26 = vunpack.i.l.bf16 %v956_v24 }
  0xa7   :  { %756 = vst.msk [vmem:[#allocation0 + $0x10] sm:$0xff] %vm711_vm2, %v957_v26   ;;  %767 = vst.msk [vmem:[#allocation0 + $0x30] sm:$0xff] %vm711_vm2, %v958_v25  }
  0xa8   :  { %v951_v27 = vpop.permute.xlu0 %950 }
  0xa9   :  { %v953_v28 = vunpack.i.h.bf16 %v951_v27  ;;  %v952_v29 = vunpack.i.l.bf16 %v951_v27 }
  0xab   :  { %745 = vst.msk [vmem:[#allocation0 + $0x28] sm:$0xff] %vm711_vm2, %v953_v28   ;;  %734 = vst.msk [vmem:[#allocation0 + $0x8] sm:$0xff] %vm711_vm2, %v952_v29  }
  0xac   :  { %v961_v30 = vpop.permute.xlu1 %960 }
  0xad   :  { %v963_v31 = vunpack.i.h.bf16 %v961_v30  ;;  %v962_v32 = vunpack.i.l.bf16 %v961_v30 }
  0xae   :  { %v805_v37 = vld [vmem:[#allocation0 + $0x10] sm:$0xff] }
  0xaf   :  { %778 = vst.msk [vmem:[#allocation0 + $0x18] sm:$0xff] %vm711_vm2, %v962_v32   ;;  %789 = vst.msk [vmem:[#allocation0 + $0x38] sm:$0xff] %vm711_vm2, %v963_v31   ;;  %v833_v40 = vld [vmem:[#allocation0 + $0x30] sm:$0xff] }
  0xb2   :  { %v826_v35 = vld [vmem:[#allocation0 + $0x28] sm:$0xff] }
  0xb3   :  { %v799_v36 = vld [vmem:[#allocation0 + $0x8] sm:$0xff]  ;;  %v933_v38 = vpack.c.bf16 %v826_v35, %v819_v33 }
  0xb4   :  { %v923_v39 = vpack.c.bf16 %v799_v36, %v794_v34 }
  0xb5   :  { %941 = vst [vmem:[%s1115_s1 + $0x10] sm:$0xff] %v933_v38  }
  0xb6   :  { %v812_v41 = vld [vmem:[#allocation0 + $0x18] sm:$0xff]  ;;  %924 = vst [vmem:[%s1115_s1] sm:$0xff] %v923_v39  }
  0xb7   :  { %v840_v42 = vld [vmem:[#allocation0 + $0x38] sm:$0xff]  ;;  %v928_v43 = vpack.c.bf16 %v812_v41, %v805_v37 }
  0xb8   :  { %v938_v44 = vpack.c.bf16 %v840_v42, %v833_v40 }
  0xb9   :  { %940 = vst [vmem:[%s1115_s1 + $0x8] sm:$0xff] %v928_v43  }
  0xba   :  { %942 = vst [vmem:[%s1115_s1 + $0x18] sm:$0xff] %v938_v44  }

// kernel: tile.1
= control target key start
LH: loop header
LB: loop body
LE: loop exit
PB: predicated region body
PF: predicated region fallthrough
CT: control target
= control target key end

     0   :  { %vm514_vm0 = vcmask 523264   ;;  %vm675_vm1 = vcmask 1047556   ;;  %vm679_vm2 = vcmask 1048064   ;;  %s1252_s0 = inlined_call_operand.vmem [shape: bf16[6,64,32], index: 0, kind: input, shape index: {}]   ;;  %s1253_s1 = inlined_call_operand.vmem [shape: bf16[384,32], index: 1, kind: output, shape index: {}]  }
   0x1   :  { %v1070_v0 = vld [vmem:[%s1252_s0 + $0x38] sm:$0xff]   ;;  %v1071_v1 = vld [vmem:[%s1252_s0 + $0x30] sm:$0xff]   ;;  %v1072_v2 = vld [vmem:[%s1252_s0 + $0x28] sm:$0xff]  }
   0x2   :  { %v1002_v3 = vunpack.c.l.bf16 %v1070_v0  ;;  %v1003_v4 = vunpack.c.h.bf16 %v1070_v0  ;;  %v1006_v5 = vunpack.c.l.bf16 %v1071_v1  ;;  %v1007_v6 = vunpack.c.h.bf16 %v1071_v1  ;;  %v1073_v7 = vld [vmem:[%s1252_s0 + $0x20] sm:$0xff]   ;;  %v1074_v8 = vld [vmem:[%s1252_s0 + $0x18] sm:$0xff]   ;;  %v1075_v9 = vld [vmem:[%s1252_s0 + $0x10] sm:$0xff]  }
   0x3   :  { %v1010_v10 = vunpack.c.l.bf16 %v1072_v2  ;;  %v1011_v11 = vunpack.c.h.bf16 %v1072_v2  ;;  %v1014_v12 = vunpack.c.l.bf16 %v1073_v7  ;;  %v1015_v13 = vunpack.c.h.bf16 %v1073_v7  ;;  %v1076_v14 = vld [vmem:[%s1252_s0 + $0x8] sm:$0xff]   ;;  %v1029_v15 = vld [vmem:[%s1252_s0] sm:$0xff]   ;;  %v1062_v16 = vld [vmem:[%s1252_s0 + $0x78] sm:$0xff]  }
   0x4   :  { %276 = vst [vmem:[#allocation1 + $0x78] sm:$0xff] %v1003_v4  ;;  %292 = vst [vmem:[#allocation1 + $0x70] sm:$0xff] %v1002_v3  ;;  %v1018_v17 = vunpack.c.l.bf16 %v1074_v8  ;;  %v1019_v18 = vunpack.c.h.bf16 %v1074_v8  ;;  %v1022_v19 = vunpack.c.l.bf16 %v1075_v9  ;;  %v1023_v20 = vunpack.c.h.bf16 %v1075_v9  ;;  %v1063_v21 = vld [vmem:[%s1252_s0 + $0x70] sm:$0xff]   ;;  %v1064_v22 = vld [vmem:[%s1252_s0 + $0x68] sm:$0xff]  }
   0x5   :  { %308 = vst [vmem:[#allocation1 + $0x68] sm:$0xff] %v1007_v6  ;;  %324 = vst [vmem:[#allocation1 + $0x60] sm:$0xff] %v1006_v5  ;;  %v1065_v23 = vld [vmem:[%s1252_s0 + $0x60] sm:$0xff]   ;;  %v1026_v24 = vunpack.c.l.bf16 %v1076_v14  ;;  %v1027_v25 = vunpack.c.h.bf16 %v1076_v14  ;;  %v1030_v26 = vunpack.c.l.bf16 %v1029_v15  ;;  %v1031_v27 = vunpack.c.h.bf16 %v1029_v15  ;;  %v1066_v28 = vld [vmem:[%s1252_s0 + $0x58] sm:$0xff]  }
   0x6   :  { %340 = vst [vmem:[#allocation1 + $0x58] sm:$0xff] %v1011_v11  ;;  %356 = vst [vmem:[#allocation1 + $0x50] sm:$0xff] %v1010_v10  ;;  %v1067_v29 = vld [vmem:[%s1252_s0 + $0x50] sm:$0xff]   ;;  %v970_v30 = vunpack.c.l.bf16 %v1062_v16  ;;  %v971_v31 = vunpack.c.h.bf16 %v1062_v16  ;;  %v974_v32 = vunpack.c.l.bf16 %v1063_v21  ;;  %v975_v33 = vunpack.c.h.bf16 %v1063_v21  ;;  %v1068_v34 = vld [vmem:[%s1252_s0 + $0x48] sm:$0xff]  }
   0x7   :  { %372 = vst [vmem:[#allocation1 + $0x48] sm:$0xff] %v1015_v13  ;;  %388 = vst [vmem:[#allocation1 + $0x40] sm:$0xff] %v1014_v12  ;;  %v1069_v35 = vld [vmem:[%s1252_s0 + $0x40] sm:$0xff]   ;;  %v978_v36 = vunpack.c.l.bf16 %v1064_v22  ;;  %v979_v37 = vunpack.c.h.bf16 %v1064_v22  ;;  %v982_v38 = vunpack.c.l.bf16 %v1065_v23  ;;  %v983_v39 = vunpack.c.h.bf16 %v1065_v23  ;;  %s1113_s0 = smov 64  }
   0x8   :  { %404 = vst [vmem:[#allocation1 + $0x38] sm:$0xff] %v1019_v18  ;;  %420 = vst [vmem:[#allocation1 + $0x30] sm:$0xff] %v1018_v17  ;;  %v986_v40 = vunpack.c.l.bf16 %v1066_v28  ;;  %v987_v41 = vunpack.c.h.bf16 %v1066_v28  ;;  %v990_v42 = vunpack.c.l.bf16 %v1067_v29  ;;  %v991_v43 = vunpack.c.h.bf16 %v1067_v29 }
   0x9   :  { %436 = vst [vmem:[#allocation1 + $0x28] sm:$0xff] %v1023_v20  ;;  %452 = vst [vmem:[#allocation1 + $0x20] sm:$0xff] %v1022_v19  ;;  %v994_v44 = vunpack.c.l.bf16 %v1068_v34  ;;  %v995_v45 = vunpack.c.h.bf16 %v1068_v34  ;;  %v998_v46 = vunpack.c.l.bf16 %v1069_v35  ;;  %v999_v47 = vunpack.c.h.bf16 %v1069_v35 }
   0xa   :  { %468 = vst [vmem:[#allocation1 + $0x18] sm:$0xff] %v1027_v25  ;;  %484 = vst [vmem:[#allocation1 + $0x10] sm:$0xff] %v1026_v24 }
   0xb   :  { %499 = vst [vmem:[#allocation1 + $0x8] sm:$0xff] %v1031_v27  ;;  %512 = vst [vmem:[#allocation1] sm:$0xff] %v1030_v26  ;;  %v582_v5 = vld [vmem:[#allocation1 + $0x70] ss:$2 sm:$0x7]  }
   0xc   :  { %20 = vst [vmem:[#allocation1 + $0xf8] sm:$0xff] %v971_v31  ;;  %36 = vst [vmem:[#allocation1 + $0xf0] sm:$0xff] %v970_v30  ;;  %v684_v48 = vld [vmem:[#allocation1 + $0x43] ss:$8 sm:$0xf0]  }
   0xd   :  { %52 = vst [vmem:[#allocation1 + $0xe8] sm:$0xff] %v975_v33  ;;  %68 = vst [vmem:[#allocation1 + $0xe0] sm:$0xff] %v974_v32  ;;  %v572_v49 = vld [vmem:[#allocation1 + $0x60] ss:$2 sm:$0x7]  }
   0xe   :  { %84 = vst [vmem:[#allocation1 + $0xd8] sm:$0xff] %v979_v37  ;;  %100 = vst [vmem:[#allocation1 + $0xd0] sm:$0xff] %v978_v36  ;;  %v682_v50 = vld [vmem:[#allocation1 + $0x43] ss:$8 sm:$0xf]  }
   0xf   :  { %116 = vst [vmem:[#allocation1 + $0xc8] sm:$0xff] %v983_v39  ;;  %132 = vst [vmem:[#allocation1 + $0xc0] sm:$0xff] %v982_v38  ;;  %v552_v51 = vld [vmem:[#allocation1 + $0x40] ss:$2 sm:$0x7]   ;;  %v686_v60 = vsel %vm675_vm1, %v684_v48, %v682_v50 }
  0x10   :  { %148 = vst [vmem:[#allocation1 + $0xb8] sm:$0xff] %v987_v41  ;;  %164 = vst [vmem:[#allocation1 + $0xb0] sm:$0xff] %v986_v40  ;;  %v532_v52 = vld [vmem:[#allocation1 + $0x20] ss:$2 sm:$0x7]  }
  0x11   :  { %180 = vst [vmem:[#allocation1 + $0xa8] sm:$0xff] %v991_v43  ;;  %196 = vst [vmem:[#allocation1 + $0xa0] sm:$0xff] %v990_v42  ;;  %v537_v53 = vld [vmem:[#allocation1 + $0x28] ss:$2 sm:$0x7]  }
  0x12   :  { %212 = vst [vmem:[#allocation1 + $0x98] sm:$0xff] %v995_v45  ;;  %228 = vst [vmem:[#allocation1 + $0x90] sm:$0xff] %v994_v44  ;;  %v513_v54 = vld [vmem:[#allocation1] ss:$2 sm:$0x7]  }
  0x13   :  { %244 = vst [vmem:[#allocation1 + $0x88] sm:$0xff] %v999_v47  ;;  %260 = vst [vmem:[#allocation1 + $0x80] sm:$0xff] %v998_v46  ;;  %v517_v55 = vld [vmem:[#allocation1 + $0x8] ss:$2 sm:$0x7]  }
  0x14   :  { %575 = vst.msk [vmem:[#allocation0 + $0x1c] ss:$8 sm:$0x7] %vm514_vm0, %v572_v49   ;;  %555 = vst.msk [vmem:[#allocation0 + $0x18] ss:$8 sm:$0x7] %vm514_vm0, %v552_v51  }
  0x15   :  { %535 = vst.msk [vmem:[#allocation0 + $0x4] ss:$8 sm:$0x7] %vm514_vm0, %v532_v52   ;;  %540 = vst.msk [vmem:[#allocation0 + $0x5] ss:$8 sm:$0x7] %vm514_vm0, %v537_v53  }
  0x16   :  { %515 = vst.msk [vmem:[#allocation0] ss:$8 sm:$0x7] %vm514_vm0, %v513_v54   ;;  %520 = vst.msk [vmem:[#allocation0 + $0x1] ss:$8 sm:$0x7] %vm514_vm0, %v517_v55  }
  0x17   :  { %v522_v56 = vld [vmem:[#allocation1 + $0x10] ss:$2 sm:$0x7]   ;;  %v527_v57 = vld [vmem:[#allocation1 + $0x18] ss:$2 sm:$0x7]  }
  0x18   :  { %525 = vst.msk [vmem:[#allocation0 + $0x2] ss:$8 sm:$0x7] %vm514_vm0, %v522_v56   ;;  %530 = vst.msk [vmem:[#allocation0 + $0x3] ss:$8 sm:$0x7] %vm514_vm0, %v527_v57  }
  0x19   :  { %v542_v58 = vld [vmem:[#allocation1 + $0x30] ss:$2 sm:$0x7]   ;;  %v547_v59 = vld [vmem:[#allocation1 + $0x38] ss:$2 sm:$0x7]  }
  0x1a   :  { %545 = vst.msk [vmem:[#allocation0 + $0x6] ss:$8 sm:$0x7] %vm514_vm0, %v542_v58   ;;  %550 = vst.msk [vmem:[#allocation0 + $0x7] ss:$8 sm:$0x7] %vm514_vm0, %v547_v59  }
  0x1b   :  { %v672_v61 = vld [vmem:[#allocation1 + $0x1] ss:$8 sm:$0xf]   ;;  %v557_v0 = vld [vmem:[#allocation1 + $0x48] ss:$2 sm:$0x7]  }
  0x1c   :  { %v674_v62 = vld [vmem:[#allocation1 + $0x1] ss:$8 sm:$0xf0]   ;;  %v562_v1 = vld [vmem:[#allocation1 + $0x50] ss:$2 sm:$0x7]  }
  0x1d   :  { %v676_v63 = vsel %vm675_vm1, %v674_v62, %v672_v61  ;;  %560 = vst.msk [vmem:[#allocation0 + $0x19] ss:$8 sm:$0x7] %vm514_vm0, %v557_v0   ;;  %565 = vst.msk [vmem:[#allocation0 + $0x1a] ss:$8 sm:$0x7] %vm514_vm0, %v562_v1  }
  0x1e   :  { %v1083_v2 = vpack.i.bf16 %v686_v60, %v676_v63  ;;  %v567_v3 = vld [vmem:[#allocation1 + $0x58] ss:$2 sm:$0x7]   ;;  %v577_v4 = vld [vmem:[#allocation1 + $0x68] ss:$2 sm:$0x7]  }
  0x1f   :  { %570 = vst.msk [vmem:[#allocation0 + $0x1b] ss:$8 sm:$0x7] %vm514_vm0, %v567_v3   ;;  %580 = vst.msk [vmem:[#allocation0 + $0x1d] ss:$8 sm:$0x7] %vm514_vm0, %v577_v4  }
  0x20   :  { %v587_v6 = vld [vmem:[#allocation1 + $0x78] ss:$2 sm:$0x7]   ;;  %1084 = vrot.lane.b32.xlu0 %v1083_v2, %s1113_s0  ;;  %585 = vst.msk [vmem:[#allocation0 + $0x1e] ss:$8 sm:$0x7] %vm514_vm0, %v582_v5  }
  0x21   :  { %590 = vst.msk [vmem:[#allocation0 + $0x1f] ss:$8 sm:$0x7] %vm514_vm0, %v587_v6   ;;  %v632_v7 = vld [vmem:[#allocation1 + $0xc0] ss:$2 sm:$0x7]  }
  0x22   :  { %v637_v8 = vld [vmem:[#allocation1 + $0xc8] ss:$2 sm:$0x7]   ;;  %635 = vst.msk [vmem:[#allocation0 + $0x48] ss:$8 sm:$0x7] %vm514_vm0, %v632_v7  }
  0x23   :  { %640 = vst.msk [vmem:[#allocation0 + $0x49] ss:$8 sm:$0x7] %vm514_vm0, %v637_v8   ;;  %v642_v9 = vld [vmem:[#allocation1 + $0xd0] ss:$2 sm:$0x7]  }
  0x24   :  { %v647_v10 = vld [vmem:[#allocation1 + $0xd8] ss:$2 sm:$0x7]   ;;  %645 = vst.msk [vmem:[#allocation0 + $0x4a] ss:$8 sm:$0x7] %vm514_vm0, %v642_v9  }
  0x25   :  { %650 = vst.msk [vmem:[#allocation0 + $0x4b] ss:$8 sm:$0x7] %vm514_vm0, %v647_v10   ;;  %v652_v11 = vld [vmem:[#allocation1 + $0xe0] ss:$2 sm:$0x7]  }
  0x26   :  { %v657_v12 = vld [vmem:[#allocation1 + $0xe8] ss:$2 sm:$0x7]   ;;  %655 = vst.msk [vmem:[#allocation0 + $0x4c] ss:$8 sm:$0x7] %vm514_vm0, %v652_v11  }
  0x27   :  { %660 = vst.msk [vmem:[#allocation0 + $0x4d] ss:$8 sm:$0x7] %vm514_vm0, %v657_v12   ;;  %v667_v13 = vld [vmem:[#allocation1 + $0xf8] ss:$2 sm:$0x7]  }
  0x28   :  { %v715_v14 = vld [vmem:[#allocation1 + $0x45] ss:$8 sm:$0xf]   ;;  %670 = vst.msk [vmem:[#allocation0 + $0x4f] ss:$8 sm:$0x7] %vm514_vm0, %v667_v13  }
  0x29   :  { %v717_v15 = vld [vmem:[#allocation1 + $0x45] ss:$8 sm:$0xf0]   ;;  %v726_v16 = vld [vmem:[#allocation1 + $0xc1] ss:$8 sm:$0xf]  }
  0x2a   :  { %v719_v17 = vsel %vm675_vm1, %v717_v15, %v715_v14  ;;  %v728_v18 = vld [vmem:[#allocation1 + $0xc1] ss:$8 sm:$0xf0]   ;;  %v662_v19 = vld [vmem:[#allocation1 + $0xf0] ss:$2 sm:$0x7]  }
  0x2b   :  { %v730_v20 = vsel %vm675_vm1, %v728_v18, %v726_v16  ;;  %665 = vst.msk [vmem:[#allocation0 + $0x4e] ss:$8 sm:$0x7] %vm514_vm0, %v662_v19   ;;  %v693_v21 = vld [vmem:[#allocation1 + $0x85] ss:$8 sm:$0xf]  }
  0x2c   :  { %v695_v22 = vld [vmem:[#allocation1 + $0x85] ss:$8 sm:$0xf0]   ;;  %v1093_v23 = vpack.i.bf16 %v730_v20, %v719_v17  ;;  %v704_v25 = vld [vmem:[#allocation1 + $0x3] ss:$8 sm:$0xf]  }
  0x2d   :  { %v697_v24 = vsel %vm675_vm1, %v695_v22, %v693_v21  ;;  %v706_v26 = vld [vmem:[#allocation1 + $0x3] ss:$8 sm:$0xf0]   ;;  %v592_v28 = vld [vmem:[#allocation1 + $0x80] ss:$2 sm:$0x7]  }
  0x2e   :  { %v708_v27 = vsel %vm675_vm1, %v706_v26, %v704_v25  ;;  %v597_v29 = vld [vmem:[#allocation1 + $0x88] ss:$2 sm:$0x7]   ;;  %1094 = vrot.lane.b32.xlu1 %v1093_v23, %s1113_s0  ;;  %595 = vst.msk [vmem:[#allocation0 + $0x30] ss:$8 sm:$0x7] %vm514_vm0, %v592_v28  }
  0x2f   :  { %v1088_v30 = vpack.i.bf16 %v708_v27, %v697_v24  ;;  %600 = vst.msk [vmem:[#allocation0 + $0x31] ss:$8 sm:$0x7] %vm514_vm0, %v597_v29   ;;  %v602_v31 = vld [vmem:[#allocation1 + $0x90] ss:$2 sm:$0x7]  }
  0x30   :  { %v607_v32 = vld [vmem:[#allocation1 + $0x98] ss:$2 sm:$0x7]   ;;  %605 = vst.msk [vmem:[#allocation0 + $0x32] ss:$8 sm:$0x7] %vm514_vm0, %v602_v31  }
  0x31   :  { %610 = vst.msk [vmem:[#allocation0 + $0x33] ss:$8 sm:$0x7] %vm514_vm0, %v607_v32   ;;  %v737_v33 = vld [vmem:[#allocation1 + $0x5] ss:$8 sm:$0xf]   ;;  %1089 = vrot.lane.b32.xlu0 %v1088_v30, %s1113_s0 }
  0x32   :  { %v739_v34 = vld [vmem:[#allocation1 + $0x5] ss:$8 sm:$0xf0]   ;;  %v748_v36 = vld [vmem:[#allocation1 + $0x81] ss:$8 sm:$0xf]  }
  0x33   :  { %v741_v35 = vsel %vm675_vm1, %v739_v34, %v737_v33  ;;  %v750_v37 = vld [vmem:[#allocation1 + $0x81] ss:$8 sm:$0xf0]   ;;  %v759_v39 = vld [vmem:[#allocation1 + $0xc3] ss:$8 sm:$0xf]  }
  0x34   :  { %v752_v38 = vsel %vm675_vm1, %v750_v37, %v748_v36  ;;  %v761_v40 = vld [vmem:[#allocation1 + $0xc3] ss:$8 sm:$0xf0]   ;;  %v770_v43 = vld [vmem:[#allocation1 + $0x41] ss:$8 sm:$0xf]  }
  0x35   :  { %v1098_v41 = vpack.i.bf16 %v752_v38, %v741_v35  ;;  %v763_v42 = vsel %vm675_vm1, %v761_v40, %v759_v39  ;;  %v772_v44 = vld [vmem:[#allocation1 + $0x41] ss:$8 sm:$0xf0]   ;;  %v612_v46 = vld [vmem:[#allocation1 + $0xa0] ss:$2 sm:$0x7]  }
  0x36   :  { %v774_v45 = vsel %vm675_vm1, %v772_v44, %v770_v43  ;;  %v617_v47 = vld [vmem:[#allocation1 + $0xa8] ss:$2 sm:$0x7]   ;;  %615 = vst.msk [vmem:[#allocation0 + $0x34] ss:$8 sm:$0x7] %vm514_vm0, %v612_v46  }
  0x37   :  { %1099 = vrot.lane.b32.xlu1 %v1098_v41, %s1113_s0  ;;  %v1103_v48 = vpack.i.bf16 %v774_v45, %v763_v42  ;;  %620 = vst.msk [vmem:[#allocation0 + $0x35] ss:$8 sm:$0x7] %vm514_vm0, %v617_v47   ;;  %v622_v49 = vld [vmem:[#allocation1 + $0xb0] ss:$2 sm:$0x7]  }
  0x38   :  { %v627_v50 = vld [vmem:[#allocation1 + $0xb8] ss:$2 sm:$0x7]   ;;  %625 = vst.msk [vmem:[#allocation0 + $0x36] ss:$8 sm:$0x7] %vm514_vm0, %v622_v49  }
  0x39   :  { %630 = vst.msk [vmem:[#allocation0 + $0x37] ss:$8 sm:$0x7] %vm514_vm0, %v627_v50   ;;  %v781_v51 = vld [vmem:[#allocation1 + $0x83] ss:$8 sm:$0xf]   ;;  %1104 = vrot.lane.b32.xlu0 %v1103_v48, %s1113_s0 }
  0x3a   :  { %v783_v52 = vld [vmem:[#allocation1 + $0x83] ss:$8 sm:$0xf0]   ;;  %v792_v54 = vld [vmem:[#allocation1 + $0xc5] ss:$8 sm:$0xf]  }
  0x3b   :  { %v785_v53 = vsel %vm675_vm1, %v783_v52, %v781_v51  ;;  %v794_v55 = vld [vmem:[#allocation1 + $0xc5] ss:$8 sm:$0xf0]  }
  0x3c   :  { %v796_v56 = vsel %vm675_vm1, %v794_v55, %v792_v54 }
  0x3d   :  { %v1108_v57 = vpack.i.bf16 %v796_v56, %v785_v53 }
  0x3f   :  { %1109 = vrot.lane.b32.xlu1 %v1108_v57, %s1113_s0 }
  0x92   :  { %v1085_v58 = vpop.permute.xlu0 %1084 }
  0x93   :  { %v1087_v59 = vunpack.i.h.bf16 %v1085_v58  ;;  %v1086_v60 = vunpack.i.l.bf16 %v1085_v58 }
  0x95   :  { %680 = vst.msk [vmem:[#allocation0] sm:$0xff] %vm679_vm2, %v1086_v60   ;;  %691 = vst.msk [vmem:[#allocation0 + $0x20] sm:$0xff] %vm679_vm2, %v1087_v59  }
  0x9c   :  { %v831_v6 = vld [vmem:[#allocation0 + $0x20] sm:$0xff] }
  0x9d   :  { %v806_v11 = vld [vmem:[#allocation0] sm:$0xff] }
  0xa0   :  { %v1095_v61 = vpop.permute.xlu1 %1094 }
  0xa1   :  { %v1097_v62 = vunpack.i.h.bf16 %v1095_v61  ;;  %v1096_v63 = vunpack.i.l.bf16 %v1095_v61 }
  0xa3   :  { %v1090_v0 = vpop.permute.xlu0 %1089  ;;  %724 = vst.msk [vmem:[#allocation0 + $0x28] sm:$0xff] %vm679_vm2, %v1096_v63   ;;  %735 = vst.msk [vmem:[#allocation0 + $0x48] sm:$0xff] %vm679_vm2, %v1097_v62  }
  0xa4   :  { %v1092_v1 = vunpack.i.h.bf16 %v1090_v0  ;;  %v1091_v2 = vunpack.i.l.bf16 %v1090_v0 }
  0xa6   :  { %713 = vst.msk [vmem:[#allocation0 + $0x8] sm:$0xff] %vm679_vm2, %v1092_v1   ;;  %702 = vst.msk [vmem:[#allocation0 + $0x40] sm:$0xff] %vm679_vm2, %v1091_v2  }
  0xa9   :  { %v1100_v3 = vpop.permute.xlu1 %1099 }
  0xaa   :  { %v1102_v4 = vunpack.i.h.bf16 %v1100_v3  ;;  %v1101_v5 = vunpack.i.l.bf16 %v1100_v3  ;;  %v838_v10 = vld [vmem:[#allocation0 + $0x28] sm:$0xff] }
  0xab   :  { %v1105_v7 = vpop.permute.xlu0 %1104  ;;  %v1045_v12 = vpack.c.bf16 %v838_v10, %v831_v6  ;;  %v866_v13 = vld [vmem:[#allocation0 + $0x48] sm:$0xff] }
  0xac   :  { %757 = vst.msk [vmem:[#allocation0 + $0x30] sm:$0xff] %vm679_vm2, %v1102_v4   ;;  %746 = vst.msk [vmem:[#allocation0 + $0x10] sm:$0xff] %vm679_vm2, %v1101_v5   ;;  %v1107_v8 = vunpack.i.h.bf16 %v1105_v7  ;;  %v1106_v9 = vunpack.i.l.bf16 %v1105_v7 }
  0xad   :  { %v811_v14 = vld [vmem:[#allocation0 + $0x8] sm:$0xff]  ;;  %v859_v15 = vld [vmem:[#allocation0 + $0x40] sm:$0xff]  ;;  %1078 = vst [vmem:[%s1253_s1 + $0x10] sm:$0xff] %v1045_v12  }
  0xae   :  { %779 = vst.msk [vmem:[#allocation0 + $0x18] sm:$0xff] %vm679_vm2, %v1107_v8   ;;  %768 = vst.msk [vmem:[#allocation0 + $0x50] sm:$0xff] %vm679_vm2, %v1106_v9   ;;  %v1035_v17 = vpack.c.bf16 %v811_v14, %v806_v11  ;;  %v1055_v18 = vpack.c.bf16 %v866_v13, %v859_v15 }
  0xb0   :  { %1036 = vst [vmem:[%s1253_s1] sm:$0xff] %v1035_v17   ;;  %1080 = vst [vmem:[%s1253_s1 + $0x20] sm:$0xff] %v1055_v18  }
  0xb1   :  { %v1110_v16 = vpop.permute.xlu1 %1109 }
  0xb2   :  { %v1112_v19 = vunpack.i.h.bf16 %v1110_v16  ;;  %v1111_v20 = vunpack.i.l.bf16 %v1110_v16 }
  0xb3   :  { %v817_v21 = vld [vmem:[#allocation0 + $0x10] sm:$0xff] }
  0xb4   :  { %790 = vst.msk [vmem:[#allocation0 + $0x38] sm:$0xff] %vm679_vm2, %v1111_v20   ;;  %801 = vst.msk [vmem:[#allocation0 + $0x58] sm:$0xff] %vm679_vm2, %v1112_v19   ;;  %v845_v25 = vld [vmem:[#allocation0 + $0x30] sm:$0xff] }
  0xb5   :  { %v824_v22 = vld [vmem:[#allocation0 + $0x18] sm:$0xff]  ;;  %v873_v24 = vld [vmem:[#allocation0 + $0x50] sm:$0xff] }
  0xb6   :  { %v1040_v23 = vpack.c.bf16 %v824_v22, %v817_v21 }
  0xb8   :  { %1077 = vst [vmem:[%s1253_s1 + $0x8] sm:$0xff] %v1040_v23  }
  0xbb   :  { %v852_v26 = vld [vmem:[#allocation0 + $0x38] sm:$0xff] }
  0xbc   :  { %v880_v27 = vld [vmem:[#allocation0 + $0x58] sm:$0xff]  ;;  %v1050_v28 = vpack.c.bf16 %v852_v26, %v845_v25 }
  0xbd   :  { %v1060_v29 = vpack.c.bf16 %v880_v27, %v873_v24 }
  0xbe   :  { %1079 = vst [vmem:[%s1253_s1 + $0x18] sm:$0xff] %v1050_v28  }
  0xbf   :  { %1081 = vst [vmem:[%s1253_s1 + $0x28] sm:$0xff] %v1060_v29  }

// kernel: mean_concat_early.1
= control target key start
LH: loop header
LB: loop body
LE: loop exit
PB: predicated region body
PF: predicated region fallthrough
CT: control target
= control target key end

     0   :  { %v840_v33 = vmov 0.0   ;;  %vm841_vm0 = vmmov 0   ;;  %s1040_s0 = inlined_call_operand.vmem [shape: bf16[16,640], index: 0, kind: input, shape index: {}]   ;;  %s1041_s1 = inlined_call_operand.vmem [shape: bf16[640,32], index: 1, kind: input, shape index: {}]   ;;  %s1042_s2 = inlined_call_operand.vmem [shape: f32[1,32], index: 2, kind: input, shape index: {}]   ;;  %s1043_s3 = inlined_call_operand.vmem [shape: f32[32,128], index: 3, kind: input, shape index: {}]   ;;  %s1044_s4 = inlined_call_operand.vmem [shape: f32[1,128], index: 4, kind: input, shape index: {}]   ;;  %s1045_s5 = inlined_call_operand.hbm [shape: f32[16,128], index: 5, kind: output, shape index: {}]  }
   0x1   :  { %v769_v0 = vld [vmem:[%s1041_s1 + $0x40] sm:$0xff]   ;;  %v773_v4 = vld [vmem:[%s1041_s1 + $0x48] sm:$0xff]   ;;  %v777_v8 = vld [vmem:[%s1041_s1 + $0x50] sm:$0xff]  }
   0x2   :  { %v770_v1 = vld [vmem:[%s1041_s1] sm:$0xff]   ;;  %666 = vmatprep.subr.bf16.mxu0 %v769_v0  ;;  %v774_v5 = vld [vmem:[%s1041_s1 + $0x8] sm:$0xff]   ;;  %v778_v9 = vld [vmem:[%s1041_s1 + $0x10] sm:$0xff]  }
   0x3   :  { %v771_v2 = vld [vmem:[%s1041_s1 + $0xc0] sm:$0xff]   ;;  %667 = vmatpush3.bf16.msra.mxu0 %v770_v1  ;;  %v775_v6 = vld [vmem:[%s1041_s1 + $0xc8] sm:$0xff]   ;;  %v779_v10 = vld [vmem:[%s1041_s1 + $0xd0] sm:$0xff]  }
   0x4   :  { %v772_v3 = vld [vmem:[%s1041_s1 + $0x80] sm:$0xff]   ;;  %688 = vmatprep.subr.bf16.mxu1 %v771_v2  ;;  %668 = vmatprep.subr.bf16.mxu0 %v773_v4  ;;  %v776_v7 = vld [vmem:[%s1041_s1 + $0x88] sm:$0xff]   ;;  %v780_v11 = vld [vmem:[%s1041_s1 + $0x90] sm:$0xff]  }
   0x5   :  { %689 = vmatpush3.bf16.msra.mxu1 %v772_v3  ;;  %v781_v12 = vld [vmem:[%s1041_s1 + $0x58] sm:$0xff]   ;;  %v785_v16 = vld [vmem:[%s1041_s1 + $0x60] sm:$0xff]   ;;  %v789_v20 = vld [vmem:[%s1041_s1 + $0x68] sm:$0xff]  }
   0x6   :  { %690 = vmatprep.subr.bf16.mxu1 %v775_v6  ;;  %v782_v13 = vld [vmem:[%s1041_s1 + $0x18] sm:$0xff]   ;;  %v786_v17 = vld [vmem:[%s1041_s1 + $0x20] sm:$0xff]   ;;  %v790_v21 = vld [vmem:[%s1041_s1 + $0x28] sm:$0xff]  }
   0x7   :  { %669 = vmatpush3.bf16.msra.mxu0 %v774_v5  ;;  %v783_v14 = vld [vmem:[%s1041_s1 + $0xd8] sm:$0xff]   ;;  %v787_v18 = vld [vmem:[%s1041_s1 + $0xe0] sm:$0xff]   ;;  %v791_v22 = vld [vmem:[%s1041_s1 + $0xe8] sm:$0xff]  }
   0x8   :  { %670 = vmatprep.subr.bf16.mxu0 %v777_v8  ;;  %v784_v15 = vld [vmem:[%s1041_s1 + $0x98] sm:$0xff]   ;;  %v788_v19 = vld [vmem:[%s1041_s1 + $0xa0] sm:$0xff]   ;;  %v792_v23 = vld [vmem:[%s1041_s1 + $0xa8] sm:$0xff]  }
   0x9   :  { %691 = vmatpush3.bf16.msra.mxu1 %v776_v7  ;;  %v793_v24 = vld [vmem:[%s1041_s1 + $0x70] sm:$0xff]   ;;  %v797_v28 = vld [vmem:[%s1041_s1 + $0x78] sm:$0xff]   ;;  %v806_v36 = vld [vmem:[%s1040_s0 + $0xc] ss:$20 sps:$4 sm:$0xff]  }
   0xa   :  { %692 = vmatprep.subr.bf16.mxu1 %v779_v10  ;;  %v794_v25 = vld [vmem:[%s1041_s1 + $0x30] sm:$0xff]   ;;  %v798_v29 = vld [vmem:[%s1041_s1 + $0x38] sm:$0xff]   ;;  %v807_v37 = vld [vmem:[%s1041_s1 + $0x100] sm:$0xff]   ;;  %454 = vmatprep.mubr.bf16.mxu1 %v806_v36 }
   0xb   :  { %671 = vmatpush3.bf16.msra.mxu0 %v778_v9  ;;  %v795_v26 = vld [vmem:[%s1041_s1 + $0xf0] sm:$0xff]   ;;  %v799_v30 = vld [vmem:[%s1041_s1 + $0xf8] sm:$0xff]   ;;  %v808_v38 = vld [vmem:[%s1041_s1 + $0x108] sm:$0xff]  }
   0xc   :  { %672 = vmatprep.subr.bf16.mxu0 %v781_v12  ;;  %v796_v27 = vld [vmem:[%s1041_s1 + $0xb0] sm:$0xff]   ;;  %v802_v32 = vld [vmem:[%s1040_s0 + $0x4] ss:$20 sps:$4 sm:$0xff]   ;;  %v804_v35 = vld [vmem:[%s1040_s0 + $0x8] ss:$20 sps:$4 sm:$0xff]  }
   0xd   :  { %693 = vmatpush3.bf16.msra.mxu1 %v780_v11  ;;  %v800_v31 = vld [vmem:[%s1040_s0] ss:$20 sps:$4 sm:$0xff]   ;;  %v803_v34 = vld [vmem:[%s1041_s1 + $0xb8] sm:$0xff]   ;;  %413 = vmatprep.mubr.bf16.mxu0 %v802_v32 }
   0xe   :  { %694 = vmatprep.subr.bf16.mxu1 %v783_v14  ;;  %v809_v39 = vld [vmem:[%s1041_s1 + $0x110] sm:$0xff]  }
   0xf   :  { %673 = vmatpush3.bf16.msra.mxu0 %v782_v13 }
  0x10   :  { %674 = vmatprep.subr.bf16.mxu0 %v785_v16 }
  0x11   :  { %695 = vmatpush3.bf16.msra.mxu1 %v784_v15 }
  0x12   :  { %696 = vmatprep.subr.bf16.mxu1 %v787_v18 }
  0x13   :  { %675 = vmatpush3.bf16.msra.mxu0 %v786_v17 }
  0x14   :  { %676 = vmatprep.subr.bf16.mxu0 %v789_v20 }
  0x15   :  { %697 = vmatpush3.bf16.msra.mxu1 %v788_v19 }
  0x16   :  { %698 = vmatprep.subr.bf16.mxu1 %v791_v22 }
  0x17   :  { %677 = vmatpush3.bf16.msra.mxu0 %v790_v21 }
  0x18   :  { %678 = vmatprep.subr.bf16.mxu0 %v793_v24 }
  0x19   :  { %699 = vmatpush3.bf16.msra.mxu1 %v792_v23 }
  0x1a   :  { %700 = vmatprep.subr.bf16.mxu1 %v795_v26 }
  0x1b   :  { %679 = vmatpush3.bf16.msra.mxu0 %v794_v25 }
  0x1c   :  { %680 = vmatprep.subr.bf16.mxu0 %v797_v28 }
  0x1d   :  { %701 = vmatpush3.bf16.msra.mxu1 %v796_v27 }
  0x1e   :  { %702 = vmatprep.subr.bf16.mxu1 %v799_v30 }
  0x1f   :  { %681 = vmatpush3.bf16.msra.mxu0 %v798_v29 }
  0x20   :  { %725 = vmatprep.subr.bf16.mxu0 %v840_v33 }
  0x21   :  { %703 = vmatpush3.bf16.msra.mxu1 %v803_v34 }
  0x22   :  { %414 = vmatmul.mubr.bf16.vlgmr.msra.gmra.mrb[0].mxu0 %v800_v31 }
  0x23   :  { %741 = vmatprep.mubr.msk.bf16.mxu0 %vm841_vm0, %v840_v33  ;;  %726 = vmatpush3.bf16.msra.mxu0 %v807_v37 }
  0x24   :  { %455 = vmatmul.mubr.bf16.vlgmr.msra.gmra.mrb[0].mxu1 %v804_v35  ;;  %727 = vmatprep.subr.bf16.mxu0 %v840_v33 }
  0x27   :  { %728 = vmatpush3.bf16.msra.mxu0 %v808_v38 }
  0x28   :  { %729 = vmatprep.subr.bf16.mxu0 %v840_v33 }
  0x29   :  { %10 = vsyncpa [#allocation3], 0  ;;  %v810_v40 = vld [vmem:[%s1041_s1 + $0x118] sm:$0xff]   ;;  %v811_v41 = vld [vmem:[%s1041_s1 + $0x120] sm:$0xff]   ;;  %vm517_vm1 = vcmask 261120   ;;  %s842_s16 = smov [#allocation2]  }
  0x2a   :  { %v812_v42 = vld [vmem:[%s1041_s1 + $0x128] sm:$0xff]   ;;  %v813_v43 = vld [vmem:[%s1041_s1 + $0x130] sm:$0xff]   ;;  %v814_v44 = vld [vmem:[%s1041_s1 + $0x138] sm:$0xff]   ;;  %s606_s17 = sshll.u32 %s842_s16, 4  ;;  %s607_s17 = int_to_ptr.vmem [resolvable:$true] %s606_s17 }
  0x2b   :  { %730 = vmatpush3.bf16.msra.mxu0 %v809_v39  ;;  %v815_v45 = vld [vmem:[%s1040_s0 + $0x10] ss:$20 sps:$4 sm:$0xff]   ;;  %v507_v47 = vld [vmem:[%s1043_s3 + $0x8] sm:$0xff]  ;;  %v509_v50 = vld [vmem:[%s1043_s3 + $0x18] sm:$0xff]  ;;  %s816_s18 = scalar_lea.vmem %s607_s17, 256  ;;  %p821_p1 = scmp.lt.s32.totalorder %s607_s17, %s607_s17 }
  0x2c   :  { %731 = vmatprep.subr.bf16.mxu0 %v840_v33  ;;  %v506_v46 = vld [vmem:[%s1043_s3] sm:$0xff]  ;;  %v508_v49 = vld [vmem:[%s1043_s3 + $0x10] sm:$0xff]  ;;  %p817_p0 = scmp.ne.s32.totalorder %s607_s17, %s816_s18  ;;  %p822_p2 = scmp.lt.s32.totalorder %s816_s18, %s816_s18 }
  0x2d   :  { %v756_v48 = vpack.c.bf16 %v507_v47, %v506_v46  ;;  %v760_v51 = vpack.c.bf16 %v509_v50, %v508_v49  ;;  %v617_v53 = vld [vmem:[%s1042_s2] ss:$0 sm:$0xff] }
  0x2e   :  { %v663_v13 = vld [vmem:[%s1044_s4] ss:$0 sm:$0xff]  ;;  %p823_p3 = por %p822_p2, %p821_p1 }
  0x2f   :  { %732 = vmatpush3.bf16.msra.mxu0 %v810_v40  ;;  %757 = vmatprep.subr.bf16.mxu1 %v756_v48 }
  0x30   :  { %733 = vmatprep.subr.bf16.mxu0 %v840_v33  ;;  %759 = vmatpush3.bf16.msra.mxu1 %v756_v48  ;;  %p824_p4 = pnand %p823_p3, %p817_p0 }
  0x31   :  { %761 = vmatprep.subr.bf16.mxu1 %v760_v51 }
  0x33   :  { %734 = vmatpush3.bf16.msra.mxu0 %v811_v41 }
  0x34   :  { %735 = vmatprep.subr.bf16.mxu0 %v840_v33  ;;  %763 = vmatpush3.bf16.msra.mxu1 %v760_v51 }
  0x37   :  { %736 = vmatpush3.bf16.msra.mxu0 %v812_v42 }
  0x38   :  { %737 = vmatprep.subr.bf16.mxu0 %v840_v33 }
  0x3b   :  { %738 = vmatpush3.bf16.msra.mxu0 %v813_v43 }
  0x3c   :  { %739 = vmatprep.subr.bf16.mxu0 %v840_v33 }
  0x3f   :  { %740 = vmatpush3.bf16.msra.mxu0 %v814_v44 }
  0x42   :  { %742 = vmatmul.mubr.bf16.vlgmr.msra.gmra.mrb[4].mxu0 %v815_v45 }
  0xf5   :  { %v682_v52 = vpop.f32.mrb[0].mxu0 }
  0xf6   :  { %v683_v54 = vpop.f32.mrb[1].mxu0 }
  0xf7   :  { %v684_v55 = vadd.f32 %v683_v54, %v682_v52  ;;  %v685_v56 = vpop.f32.mrb[2].mxu0  ;;  %v704_v57 = vpop.f32.mrb[0].mxu1 }
  0xf8   :  { %v686_v58 = vpop.f32.mrb[3].mxu0  ;;  %v705_v61 = vpop.f32.mrb[1].mxu1 }
  0xf9   :  { %v416_v59 = vadd.f32 %v684_v55, %v617_v53  ;;  %v687_v60 = vadd.f32 %v686_v58, %v685_v56  ;;  %v706_v62 = vadd.f32 %v705_v61, %v704_v57  ;;  %v707_v63 = vpop.f32.mrb[2].mxu1 }
  0xfa   :  { %v708_v1 = vpop.f32.mrb[3].mxu1 }
  0xfb   :  { %v419_v0 = vadd.f32 %v687_v60, %v617_v53  ;;  %v709_v2 = vadd.f32 %v708_v1, %v707_v63  ;;  %v457_v3 = vadd.f32 %v706_v62, %v416_v59 }
  0xfd   :  { %v460_v4 = vadd.f32 %v709_v2, %v419_v0 }
 0x115   :  { %v497_v5 = vpop.f32.mrb[4].mxu0 }
 0x116   :  { %v498_v6 = vadd.f32 %v497_v5, %v457_v3  ;;  %v743_v7 = vpop.f32.mrb[5].mxu0 }
 0x117   :  { %v500_v8 = vpop.f32.mrb[6].mxu0 }
 0x118   :  { %v504_v9 = vmax.f32 %v498_v6, 0.0  ;;  %v501_v10 = vadd.f32 %v500_v8, %v460_v4  ;;  %v744_v11 = vpop.f32.mrb[7].mxu0 }
 0x11a   :  { %v505_v12 = vmax.f32 %v501_v10, 0.0  ;;  %753 = vmatprep.mubr.msk.f32.mxu1 %vm517_vm1, %v504_v9 }
 0x11c   :  { %754 = vmatmul.mubr.msk.f32.vlgmr.msra.gmra.mrb[4].mxu1 %vm517_vm1, %v505_v12 }
 0x1ef   :  { %v755_v14 = vpop.f32.mrb[4].mxu1 }
 0x1f0   :  { %v596_v15 = vadd.f32 %v755_v14, %v663_v13  ;;  %v590_v16 = vpop.f32.mrb[5].mxu1 }
 0x1f1   :  { %v591_v17 = vadd.f32 %v663_v13, %v590_v16 }
 0x1f2   :  { %600 = vst [vmem:[#allocation2 + $0x8] sm:$0xff] %v596_v15 }
 0x1f3   :  { %599 = vst [vmem:[#allocation2] sm:$0xff] %v591_v17 }
 0x1f4   :  { %827 = shalt.err (!%p824_p4)
}
 0x1f5   :  { %s828_s4 = scalar_lea.hbm %s1045_s5, 256 }
 0x1f6   :  { %p829_p5 = scmp.ne.s32.totalorder %s1045_s5, %s828_s4  ;;  %p832_p6 = scmp.lt.u32.totalorder %s828_s4, %s1045_s5 }
 0x1f8   :  { %p834_p7 = pnand %p832_p6, %p829_p5 }
 0x1fa   :  { %837 = shalt.err (!%p834_p7)
}
 0x1fb   :  { %s843_s25 = smov 128   ;;  %s844_s26 = smov 8  }
 0x1fc   :  { %612 = dma.vmem_to_hbm [thread:$0]  %s607_s17, 256, %s1045_s5, [#allocation3], %s843_s25, %s843_s25, %s844_s26  }
 0x1fd   :  { %838 = dma.done.wait [#allocation3], 256  }
 0x1fe   :  { %839 = vsyncadd [#allocation3], 4294967040 }
 0x1ff   :  { %616 = vsyncpa [#allocation3], 1 }

</bundles_post_ra>
